<compile_context>
chip_gen: v7x
topology: tpu7x:2x2x1
jax: 0.10.0
libtpu: 0.0.40
codegen_flags: <defaults>
</compile_context>

<pallas_src>
import functools

import jax
import jax.numpy as jnp
from jax.experimental import pallas as pl
from jax.experimental.pallas import tpu as pltpu

_D_IN = 1024
_HID = 64            # hidden dim padded from 60 for sublane/lane alignment
_HID_REAL = 60


def _round_up(a, m):
    return -(-a // m) * m


def _make_kernel(dot_dtype):
    def kernel(x_ref, w1_ref, b1_ref, w2_ref, b2_ref, w3t_ref, b3_ref, o_ref):
        # Hot path: two MXU matmuls (f32 accumulation) + VPU relu/bias +
        # XLU lane-reduce, all fused in VMEM.  Only x streams from HBM.
        x = x_ref[...].astype(dot_dtype)                                  # (tb, 1024)
        h1 = jnp.dot(x, w1_ref[...], preferred_element_type=jnp.float32)  # (tb, 64)
        h1 = jnp.maximum(h1 + b1_ref[...], 0.0)
        h2 = jnp.dot(h1.astype(dot_dtype), w2_ref[...],
                     preferred_element_type=jnp.float32)                  # (tb, 64)
        h2 = jnp.maximum(h2 + b2_ref[...], 0.0)
        # Final layer: elementwise multiply with the (1,64) W3 row + lane
        # reduce; b3 is an SMEM scalar.
        y = jnp.sum(h2 * w3t_ref[...], axis=-1, keepdims=True) + b3_ref[0, 0]
        o_ref[...] = y.astype(o_ref.dtype)                                # (tb, 1)
    return kernel


@functools.partial(jax.jit, static_argnames=("tile_b", "bf16_matmul"))
def mlp_head_forward(x, w1, b1, w2, b2, w3, b3, *, tile_b=2048, bf16_matmul=False):
    """Fused MLP-head forward.

    x  : (B, 1024) float32 or bfloat16 (cast to bf16 *upstream* to halve HBM)
    w1 : (1024, 60)  b1 : (60,)   (weights stored (in, out) == PyTorch W.T)
    w2 : (60, 60)    b2 : (60,)
    w3 : (60, 1)     b3 : (1,)
    returns (B, 1) in x.dtype
    """
    B, d_in = x.shape
    assert d_in == _D_IN
    f32 = jnp.float32
    pad_h = _HID - _HID_REAL

    # MXU operand dtype: bf16 if requested or if x already arrives as bf16.
    use_bf16 = bool(bf16_matmul) or (x.dtype == jnp.bfloat16)
    dot_dtype = jnp.bfloat16 if use_bf16 else f32

    # Zero-pad the awkward 60-wide hidden dim to 64.  Padded h1/h2 columns stay
    # exactly 0 through bias+ReLU (zero weight cols + zero bias), and padded W
    # rows are 0, so results are unchanged.
    # TODO(synk): if this head is called repeatedly, hoist this weight prep out
    # of the per-call path (it is tiny but avoidable).
    w1p = jnp.pad(w1.astype(dot_dtype), ((0, 0), (0, pad_h)))            # (1024, 64)
    b1p = jnp.pad(b1.astype(f32).reshape(1, -1), ((0, 0), (0, pad_h)))   # (1, 64)
    w2p = jnp.pad(w2.astype(dot_dtype), ((0, pad_h), (0, pad_h)))        # (64, 64)
    b2p = jnp.pad(b2.astype(f32).reshape(1, -1), ((0, 0), (0, pad_h)))   # (1, 64)
    w3t = jnp.pad(w3.astype(f32).reshape(1, -1), ((0, 0), (0, pad_h)))   # (1, 64)
    b3s = b3.astype(f32).reshape(1, 1)                                   # SMEM scalar

    # Batch tile: multiple of 8 sublanes; clamp so the grid has >=4 steps when
    # B allows (dual-TC sharding + pipelining), never below 8 rows.
    tb = min(int(tile_b), _round_up(pl.cdiv(B, 4), 8))
    tb = max(8, (tb // 8) * 8)
    grid = (pl.cdiv(B, tb),)   # ragged last block handled by Pallas masking

    out = pl.pallas_call(
        _make_kernel(dot_dtype),
        out_shape=jax.ShapeDtypeStruct((B, 1), x.dtype),
        grid=grid,
        in_specs=[
            pl.BlockSpec((tb, _D_IN), lambda i: (i, 0)),        # x tile (streamed)
            pl.BlockSpec((_D_IN, _HID), lambda i: (0, 0)),      # W1 (resident)
            pl.BlockSpec((1, _HID), lambda i: (0, 0)),          # b1
            pl.BlockSpec((_HID, _HID), lambda i: (0, 0)),       # W2
            pl.BlockSpec((1, _HID), lambda i: (0, 0)),          # b2
            pl.BlockSpec((1, _HID), lambda i: (0, 0)),          # W3 as a row
            pl.BlockSpec(memory_space=pltpu.MemorySpace.SMEM),  # b3 scalar
        ],
        out_specs=pl.BlockSpec((tb, 1), lambda i: (i, 0)),
        compiler_params=pltpu.CompilerParams(
            dimension_semantics=("parallel",),
            vmem_limit_bytes=48 * 1024 * 1024,
        ),
    )(x, w1p, b1p, w2p, b2p, w3t, b3s)
    return out


def init_params(key):
    """Deterministic init mimicking PyTorch nn.Linear default (U(+-1/sqrt(fan_in))).
    Weights are returned already transposed to (in_features, out_features)."""
    ks = jax.random.split(key, 6)

    def linear(kw, kb, fan_in, fan_out):
        bound = 1.0 / jnp.sqrt(jnp.float32(fan_in))
        w = jax.random.uniform(kw, (fan_in, fan_out), jnp.float32, -bound, bound)
        b = jax.random.uniform(kb, (fan_out,), jnp.float32, -bound, bound)
        return w, b

    w1, b1 = linear(ks[0], ks[1], 1024, 60)
    w2, b2 = linear(ks[2], ks[3], 60, 60)
    w3, b3 = linear(ks[4], ks[5], 60, 1)
    return w1, b1, w2, b2, w3, b3


def reference_forward(x, w1, b1, w2, b2, w3, b3):
    h1 = jnp.maximum(x @ w1 + b1, 0.0)
    h2 = jnp.maximum(h1 @ w2 + b2, 0.0)
    return h2 @ w3 + b3


if __name__ == "__main__":
    key = jax.random.PRNGKey(0)
    k_x, k_p = jax.random.split(key)
    params = init_params(k_p)

    # Small shapes; B=13 and B=40 exercise the ragged-last-block (masked) path,
    # B=16 the exactly-divisible path.
    for B in (16, 13, 40):
        x = jax.random.normal(jax.random.fold_in(k_x, B), (B, 1024), jnp.float32)
        out = jax.block_until_ready(mlp_head_forward(x, *params))
        ref = reference_forward(x, *params)
        assert out.shape == (B, 1), out.shape
        err = float(jnp.max(jnp.abs(out - ref)))
        assert err < 1e-4, err

    # bf16 MXU-operand path (v7x lever); looser tolerance, numerics-approved use.
    xb = jax.random.normal(jax.random.fold_in(k_x, 99), (32, 1024), jnp.float32)
    outb = jax.block_until_ready(mlp_head_forward(xb, *params, bf16_matmul=True))
    refb = reference_forward(xb, *params)
    errb = float(jnp.max(jnp.abs(outb - refb)))
    assert errb < 5e-2, errb

    print("KERNEL_OK")
</pallas_src>

<mosaic_0001>
module attributes {stable_mosaic.version = 11 : i64} {
  func.func @kernel(%arg0: i32, %arg1: memref<8x1024xf32, #tpu.memory_space<vmem>>, %arg2: memref<1024x64xf32, #tpu.memory_space<vmem>>, %arg3: memref<1x64xf32, #tpu.memory_space<vmem>>, %arg4: memref<64x64xf32, #tpu.memory_space<vmem>>, %arg5: memref<1x64xf32, #tpu.memory_space<vmem>>, %arg6: memref<1x64xf32, #tpu.memory_space<vmem>>, %arg7: memref<1x1xf32, #tpu.memory_space<smem>>, %arg8: memref<8x1xf32, #tpu.memory_space<vmem>>) attributes {dimension_semantics = [#tpu.dimension_semantics<parallel>], iteration_bounds = array<i64: 2>, scalar_prefetch = 0 : i64, scratch_operands = 0 : i64, tpu.core_type = #tpu.core_type<tc>, window_params = [{transform_indices = @transform_0, window_bounds = array<i64: 8, 1024>}, {pipeline_mode = #tpu.pipeline_mode<synchronous>, transform_indices = @transform_1, window_bounds = array<i64: 1024, 64>}, {pipeline_mode = #tpu.pipeline_mode<synchronous>, transform_indices = @transform_2, window_bounds = array<i64: 1, 64>}, {pipeline_mode = #tpu.pipeline_mode<synchronous>, transform_indices = @transform_3, window_bounds = array<i64: 64, 64>}, {pipeline_mode = #tpu.pipeline_mode<synchronous>, transform_indices = @transform_4, window_bounds = array<i64: 1, 64>}, {pipeline_mode = #tpu.pipeline_mode<synchronous>, transform_indices = @transform_5, window_bounds = array<i64: 1, 64>}, {transform_indices = @transform_6, window_bounds = array<i64: 1, 1>}, {transform_indices = @transform_7, window_bounds = array<i64: 8, 1>}]} {
    %c0 = arith.constant 0 : index
    %c0_0 = arith.constant 0 : index
    %0 = vector.load %arg1[%c0, %c0_0] : memref<8x1024xf32, #tpu.memory_space<vmem>>, vector<8x1024xf32>
    %c0_1 = arith.constant 0 : index
    %c0_2 = arith.constant 0 : index
    %1 = vector.load %arg2[%c0_1, %c0_2] : memref<1024x64xf32, #tpu.memory_space<vmem>>, vector<1024x64xf32>
    %cst = arith.constant dense<0.000000e+00> : vector<8x64xf32>
    %2 = tpu.matmul %0, %1, %cst {dimension_numbers = #tpu.dot_dimension_numbers<[1], [0], [0], [1], [0, 0, 1, 1], [], []>} : vector<8x1024xf32>, vector<1024x64xf32>, vector<8x64xf32> -> vector<8x64xf32>
    %c0_3 = arith.constant 0 : index
    %c0_4 = arith.constant 0 : index
    %3 = vector.load %arg3[%c0_3, %c0_4] : memref<1x64xf32, #tpu.memory_space<vmem>>, vector<1x64xf32>
    %4 = vector.broadcast %3 : vector<1x64xf32> to vector<8x64xf32>
    %5 = arith.addf %2, %4 : vector<8x64xf32>
    %cst_5 = arith.constant 0.000000e+00 : f32
    %6 = vector.broadcast %cst_5 : f32 to vector<8x64xf32>
    %7 = arith.maximumf %5, %6 : vector<8x64xf32>
    %c0_6 = arith.constant 0 : index
    %c0_7 = arith.constant 0 : index
    %8 = vector.load %arg4[%c0_6, %c0_7] : memref<64x64xf32, #tpu.memory_space<vmem>>, vector<64x64xf32>
    %cst_8 = arith.constant dense<0.000000e+00> : vector<8x64xf32>
    %9 = tpu.matmul %7, %8, %cst_8 {dimension_numbers = #tpu.dot_dimension_numbers<[1], [0], [0], [1], [0, 0, 1, 1], [], []>} : vector<8x64xf32>, vector<64x64xf32>, vector<8x64xf32> -> vector<8x64xf32>
    %c0_9 = arith.constant 0 : index
    %c0_10 = arith.constant 0 : index
    %10 = vector.load %arg5[%c0_9, %c0_10] : memref<1x64xf32, #tpu.memory_space<vmem>>, vector<1x64xf32>
    %11 = vector.broadcast %10 : vector<1x64xf32> to vector<8x64xf32>
    %12 = arith.addf %9, %11 : vector<8x64xf32>
    %cst_11 = arith.constant 0.000000e+00 : f32
    %13 = vector.broadcast %cst_11 : f32 to vector<8x64xf32>
    %14 = arith.maximumf %12, %13 : vector<8x64xf32>
    %c0_12 = arith.constant 0 : index
    %c0_13 = arith.constant 0 : index
    %15 = vector.load %arg6[%c0_12, %c0_13] : memref<1x64xf32, #tpu.memory_space<vmem>>, vector<1x64xf32>
    %16 = vector.broadcast %15 : vector<1x64xf32> to vector<8x64xf32>
    %17 = arith.mulf %14, %16 : vector<8x64xf32>
    %cst_14 = arith.constant dense<0.000000e+00> : vector<8xf32>
    %18 = vector.multi_reduction <add>, %17, %cst_14 [1] : vector<8x64xf32> to vector<8xf32>
    %19 = vector.shape_cast %18 : vector<8xf32> to vector<8x1xf32>
    %c0_15 = arith.constant 0 : index
    %c0_16 = arith.constant 0 : index
    %20 = memref.load %arg7[%c0_15, %c0_16] : memref<1x1xf32, #tpu.memory_space<smem>>
    %21 = vector.broadcast %20 : f32 to vector<8x1xf32>
    %22 = arith.addf %19, %21 : vector<8x1xf32>
    %c0_17 = arith.constant 0 : index
    %c0_18 = arith.constant 0 : index
    %23 = vector.load %arg8[%c0_17, %c0_18] : memref<8x1xf32, #tpu.memory_space<vmem>>, vector<8x1xf32>
    tpu.vector_store %arg8[%c0_17, %c0_18], %22 {strides = array<i32>} : memref<8x1xf32, #tpu.memory_space<vmem>>, vector<8x1xf32>,
    return
  }
  func.func @transform_0(%arg0: i32) -> (i32, i32) {
    %c0_i32 = arith.constant 0 : i32
    %c0_i32_0 = arith.constant 0 : i32
    return %arg0, %c0_i32 : i32, i32
  }
  func.func @transform_1(%arg0: i32) -> (i32, i32) {
    %c0_i32 = arith.constant 0 : i32
    %c0_i32_0 = arith.constant 0 : i32
    %c0_i32_1 = arith.constant 0 : i32
    return %c0_i32, %c0_i32_0 : i32, i32
  }
  func.func @transform_2(%arg0: i32) -> (i32, i32) {
    %c0_i32 = arith.constant 0 : i32
    %c0_i32_0 = arith.constant 0 : i32
    %c0_i32_1 = arith.constant 0 : i32
    return %c0_i32, %c0_i32_0 : i32, i32
  }
  func.func @transform_3(%arg0: i32) -> (i32, i32) {
    %c0_i32 = arith.constant 0 : i32
    %c0_i32_0 = arith.constant 0 : i32
    %c0_i32_1 = arith.constant 0 : i32
    return %c0_i32, %c0_i32_0 : i32, i32
  }
  func.func @transform_4(%arg0: i32) -> (i32, i32) {
    %c0_i32 = arith.constant 0 : i32
    %c0_i32_0 = arith.constant 0 : i32
    %c0_i32_1 = arith.constant 0 : i32
    return %c0_i32, %c0_i32_0 : i32, i32
  }
  func.func @transform_5(%arg0: i32) -> (i32, i32) {
    %c0_i32 = arith.constant 0 : i32
    %c0_i32_0 = arith.constant 0 : i32
    %c0_i32_1 = arith.constant 0 : i32
    return %c0_i32, %c0_i32_0 : i32, i32
  }
  func.func @transform_6(%arg0: i32) -> (i32, i32) {
    %c0_i32 = arith.constant 0 : i32
    %c0_i32_0 = arith.constant 0 : i32
    %c0_i32_1 = arith.constant 0 : i32
    return %c0_i32, %c0_i32_0 : i32, i32
  }
  func.func @transform_7(%arg0: i32) -> (i32, i32) {
    %c0_i32 = arith.constant 0 : i32
    %c0_i32_0 = arith.constant 0 : i32
    return %arg0, %c0_i32 : i32, i32
  }
}

</mosaic_0001>

<bundles_post_ra>
// kernel: mlp_head_forward.1
= control target key start
LH: loop header
LB: loop body
LE: loop exit
PB: predicated region body
PF: predicated region fallthrough
CT: control target
= control target key end

     0   :  { %s1249_s26 = smov 0   ;;  %s1707_s0 = inlined_call_operand.vmem [shape: f32[16,1024], index: 0, kind: input, shape index: {}]   ;;  %s1708_s1 = inlined_call_operand.vmem [shape: f32[1024,64], index: 1, kind: input, shape index: {}]   ;;  %s1709_s2 = inlined_call_operand.vmem [shape: f32[1,64], index: 2, kind: input, shape index: {}]   ;;  %s1710_s3 = inlined_call_operand.vmem [shape: f32[64,64], index: 3, kind: input, shape index: {}]   ;;  %s1711_s4 = inlined_call_operand.vmem [shape: f32[1,64], index: 4, kind: input, shape index: {}]   ;;  %s1712_s5 = inlined_call_operand.vmem [shape: f32[1,64], index: 5, kind: input, shape index: {}]   ;;  %s1713_s6 = inlined_call_operand.<no memory space> [shape: f32[1,1], index: 6, kind: input, shape index: {}]   ;;  %s1714_s7 = inlined_call_operand.vmem [shape: f32[16,1], index: 7, kind: output, shape index: {}]  }
   0x1   :  { %12 = sst [smem:[#allocation2]] %s1713_s6 }
   0x2 LB: > { %s861_s27 = sadd.s32 4294967295, %s1201_s26   ;;  %p865_p0 = scmp.ge.s32.totalorder %s1201_s26, 1  ;;  %s1201_s26 = sphi %s1249_s26, %s18_s26  }
   0x3   : > { %p238_p1 = scmp.lt.s32.totalorder %s1201_s26, 3 }
   0x5   : > { %p239_p2 = pnand %p865_p0, %p238_p1 }
   0x6   : > { %v302_v0 = vld [vmem:[%s1708_s1 + $0x80] sm:$0xff] (!%p239_p2)  ;;  %v303_v1 = vld [vmem:[%s1708_s1 + $0x88] sm:$0xff] (!%p239_p2)  ;;  %v304_v11 = vld [vmem:[%s1708_s1 + $0x90] sm:$0xff] (!%p239_p2)  ;;  %p1331_p3 = scmp.lt.s32.totalorder (!%p239_p2), %s861_s27, 1  ;;  %vm1204_vm0 = vmmov (!%p239_p2), 0   ;;  %vm717_vm1 = vcmask (!%p239_p2), 523264  }
   0x7   : > { %242 = sbr.rel (%p239_p2) target bundleno = 658 (0x292), region = 48  ;;  %v286_v2 = vld [vmem:[%s1708_s1] sm:$0xff] (!%p239_p2)  ;;  %v1044_v3 = vpack.c.bf16 (!%p239_p2), %v303_v1, %v302_v0  ;;  %v287_v4 = vld [vmem:[%s1708_s1 + $0x8] sm:$0xff] (!%p239_p2)  ;;  %v305_v13 = vld [vmem:[%s1708_s1 + $0x98] sm:$0xff] (!%p239_p2)  ;;  %s803_s9 = sld [smem:[#allocation2]] (!%p239_p2)  ;;  %vm806_vm2 = vcmask (!%p239_p2), 7168  }
   0x8   : > { %v334_v5 = vld [vmem:[%s1708_s1 + $0x180] sm:$0xff] (!%p239_p2)  ;;  %v335_v6 = vld [vmem:[%s1708_s1 + $0x188] sm:$0xff] (!%p239_p2)  ;;  %v1046_v7 = vpack.c.bf16 (!%p239_p2), %v287_v4, %v286_v2  ;;  %v288_v14 = vld [vmem:[%s1708_s1 + $0x10] sm:$0xff] (!%p239_p2)  ;;  %v1048_v16 = vpack.c.bf16 (!%p239_p2), %v305_v13, %v304_v11 }
   0x9   : > { %v1076_v8 = vpack.c.bf16 (!%p239_p2), %v335_v6, %v334_v5  ;;  %v318_v9 = vld [vmem:[%s1708_s1 + $0x100] sm:$0xff] (!%p239_p2)  ;;  %v319_v10 = vld [vmem:[%s1708_s1 + $0x108] sm:$0xff] (!%p239_p2)  ;;  %1045 = vmatprep.subr.bf16.mxu0 (!%p239_p2), %v1044_v3  ;;  %v289_v15 = vld [vmem:[%s1708_s1 + $0x18] sm:$0xff] (!%p239_p2) }
   0xa   : > { %v1078_v12 = vpack.c.bf16 (!%p239_p2), %v319_v10, %v318_v9  ;;  %1047 = vmatpush3.bf16.msra.mxu0 (!%p239_p2), %v1046_v7  ;;  %v1050_v17 = vpack.c.bf16 (!%p239_p2), %v289_v15, %v288_v14  ;;  %v336_v18 = vld [vmem:[%s1708_s1 + $0x190] sm:$0xff] (!%p239_p2)  ;;  %v337_v19 = vld [vmem:[%s1708_s1 + $0x198] sm:$0xff] (!%p239_p2)  ;;  %v306_v23 = vld [vmem:[%s1708_s1 + $0xa0] sm:$0xff] (!%p239_p2) }
   0xb   : > { %1077 = vmatprep.subr.bf16.mxu1 (!%p239_p2), %v1076_v8  ;;  %v320_v20 = vld [vmem:[%s1708_s1 + $0x110] sm:$0xff] (!%p239_p2)  ;;  %v1080_v21 = vpack.c.bf16 (!%p239_p2), %v337_v19, %v336_v18  ;;  %v321_v22 = vld [vmem:[%s1708_s1 + $0x118] sm:$0xff] (!%p239_p2)  ;;  %v307_v24 = vld [vmem:[%s1708_s1 + $0xa8] sm:$0xff] (!%p239_p2)  ;;  %1049 = vmatprep.subr.bf16.mxu0 (!%p239_p2), %v1048_v16 }
   0xc   : > { %1079 = vmatpush3.bf16.msra.mxu1 (!%p239_p2), %v1078_v12  ;;  %v1082_v25 = vpack.c.bf16 (!%p239_p2), %v321_v22, %v320_v20  ;;  %v1052_v26 = vpack.c.bf16 (!%p239_p2), %v307_v24, %v306_v23  ;;  %v290_v27 = vld [vmem:[%s1708_s1 + $0x20] sm:$0xff] (!%p239_p2)  ;;  %v291_v28 = vld [vmem:[%s1708_s1 + $0x28] sm:$0xff] (!%p239_p2)  ;;  %v308_v35 = vld [vmem:[%s1708_s1 + $0xb0] sm:$0xff] (!%p239_p2) }
   0xd   : > { %v338_v29 = vld [vmem:[%s1708_s1 + $0x1a0] sm:$0xff] (!%p239_p2)  ;;  %1081 = vmatprep.subr.bf16.mxu1 (!%p239_p2), %v1080_v21  ;;  %v339_v30 = vld [vmem:[%s1708_s1 + $0x1a8] sm:$0xff] (!%p239_p2)  ;;  %v1054_v33 = vpack.c.bf16 (!%p239_p2), %v291_v28, %v290_v27  ;;  %v309_v36 = vld [vmem:[%s1708_s1 + $0xb8] sm:$0xff] (!%p239_p2) }
   0xe   : > { %v322_v31 = vld [vmem:[%s1708_s1 + $0x120] sm:$0xff]  ;;  %v323_v32 = vld [vmem:[%s1708_s1 + $0x128] sm:$0xff]  ;;  %1051 = vmatpush3.bf16.msra.mxu0 %v1050_v17  ;;  %v1084_v34 = vpack.c.bf16 %v339_v30, %v338_v29  ;;  %v292_v37 = vld [vmem:[%s1708_s1 + $0x30] sm:$0xff]  ;;  %v1056_v39 = vpack.c.bf16 %v309_v36, %v308_v35  ;;  %s1717_s27 = smov (!%p1331_p3, %s861_s27), 1 }
   0xf   : > { %1053 = vmatprep.subr.bf16.mxu0 %v1052_v26  ;;  %v1086_v38 = vpack.c.bf16 %v323_v32, %v322_v31  ;;  %v293_v40 = vld [vmem:[%s1708_s1 + $0x38] sm:$0xff]  ;;  %v340_v41 = vld [vmem:[%s1708_s1 + $0x1b0] sm:$0xff]  ;;  %v310_v46 = vld [vmem:[%s1708_s1 + $0xc0] sm:$0xff]  ;;  %s875_s29 = sshll.u32 %s1717_s27, 6  ;;  %s868_s10 = sshll.u32 %s1717_s27, 3 }
  0x10   : > { %1083 = vmatpush3.bf16.msra.mxu1 %v1082_v25  ;;  %v341_v42 = vld [vmem:[%s1708_s1 + $0x1b8] sm:$0xff]  ;;  %v324_v44 = vld [vmem:[%s1708_s1 + $0x130] sm:$0xff]  ;;  %v311_v47 = vld [vmem:[%s1708_s1 + $0xc8] sm:$0xff]  ;;  %v1058_v48 = vpack.c.bf16 %v293_v40, %v292_v37  ;;  %s1423_s20 = scalar_lea.vmem %s1707_s0, %s875_s29  ;;  %s277_s13 = scalar_lea.vmem %s1714_s7, %s868_s10 }
  0x11   : > { %1085 = vmatprep.subr.bf16.mxu1 %v1084_v34  ;;  %v1088_v43 = vpack.c.bf16 %v341_v42, %v340_v41  ;;  %v325_v45 = vld [vmem:[%s1708_s1 + $0x138] sm:$0xff]  ;;  %v342_v49 = vld [vmem:[%s1708_s1 + $0x1c0] sm:$0xff]  ;;  %v343_v50 = vld [vmem:[%s1708_s1 + $0x1c8] sm:$0xff]  ;;  %v1060_v52 = vpack.c.bf16 %v311_v47, %v310_v46 }
  0x12   : > { %1055 = vmatpush3.bf16.msra.mxu0 %v1054_v33  ;;  %v1090_v51 = vpack.c.bf16 %v325_v45, %v324_v44  ;;  %v294_v53 = vld [vmem:[%s1708_s1 + $0x40] sm:$0xff]  ;;  %v295_v54 = vld [vmem:[%s1708_s1 + $0x48] sm:$0xff]  ;;  %v1092_v56 = vpack.c.bf16 %v343_v50, %v342_v49  ;;  %v312_v58 = vld [vmem:[%s1708_s1 + $0xd0] sm:$0xff] }
  0x13   : > { %1057 = vmatprep.subr.bf16.mxu0 %v1056_v39  ;;  %v326_v55 = vld [vmem:[%s1708_s1 + $0x140] sm:$0xff]  ;;  %v327_v57 = vld [vmem:[%s1708_s1 + $0x148] sm:$0xff]  ;;  %v313_v59 = vld [vmem:[%s1708_s1 + $0xd8] sm:$0xff]  ;;  %v1062_v62 = vpack.c.bf16 %v295_v54, %v294_v53 }
  0x14   : > { %1087 = vmatpush3.bf16.msra.mxu1 %v1086_v38  ;;  %v344_v60 = vld [vmem:[%s1708_s1 + $0x1d0] sm:$0xff]  ;;  %v345_v61 = vld [vmem:[%s1708_s1 + $0x1d8] sm:$0xff]  ;;  %v1094_v63 = vpack.c.bf16 %v327_v57, %v326_v55  ;;  %v1064_v0 = vpack.c.bf16 %v313_v59, %v312_v58  ;;  %v314_v6 = vld [vmem:[%s1708_s1 + $0xe0] sm:$0xff] }
  0x15   : > { %1089 = vmatprep.subr.bf16.mxu1 %v1088_v43  ;;  %v296_v1 = vld [vmem:[%s1708_s1 + $0x50] sm:$0xff]  ;;  %v297_v2 = vld [vmem:[%s1708_s1 + $0x58] sm:$0xff]  ;;  %v1096_v4 = vpack.c.bf16 %v345_v61, %v344_v60  ;;  %v315_v7 = vld [vmem:[%s1708_s1 + $0xe8] sm:$0xff] }
  0x16   : > { %1059 = vmatpush3.bf16.msra.mxu0 %v1058_v48  ;;  %v328_v3 = vld [vmem:[%s1708_s1 + $0x150] sm:$0xff]  ;;  %v329_v5 = vld [vmem:[%s1708_s1 + $0x158] sm:$0xff]  ;;  %v346_v8 = vld [vmem:[%s1708_s1 + $0x1e0] sm:$0xff]  ;;  %v1066_v10 = vpack.c.bf16 %v297_v2, %v296_v1  ;;  %v1068_v14 = vpack.c.bf16 %v315_v7, %v314_v6 }
  0x17   : > { %1061 = vmatprep.subr.bf16.mxu0 %v1060_v52  ;;  %v347_v9 = vld [vmem:[%s1708_s1 + $0x1e8] sm:$0xff]  ;;  %v298_v11 = vld [vmem:[%s1708_s1 + $0x60] sm:$0xff]  ;;  %v1098_v13 = vpack.c.bf16 %v329_v5, %v328_v3  ;;  %v316_v19 = vld [vmem:[%s1708_s1 + $0xf0] sm:$0xff] }
  0x18   : > { %1091 = vmatpush3.bf16.msra.mxu1 %v1090_v51  ;;  %v299_v12 = vld [vmem:[%s1708_s1 + $0x68] sm:$0xff]  ;;  %v330_v15 = vld [vmem:[%s1708_s1 + $0x160] sm:$0xff]  ;;  %v1100_v18 = vpack.c.bf16 %v347_v9, %v346_v8  ;;  %v317_v20 = vld [vmem:[%s1708_s1 + $0xf8] sm:$0xff] }
  0x19   : > { %1093 = vmatprep.subr.bf16.mxu1 %v1092_v56  ;;  %v331_v16 = vld [vmem:[%s1708_s1 + $0x168] sm:$0xff]  ;;  %v281_v21 = vld [vmem:[%s1423_s20 + $0x18] sm:$0xff]  ;;  %v348_v22 = vld [vmem:[%s1708_s1 + $0x1f0] sm:$0xff]  ;;  %v1070_v24 = vpack.c.bf16 %v299_v12, %v298_v11  ;;  %v1072_v26 = vpack.c.bf16 %v317_v20, %v316_v19 }
  0x1a   : > { %1063 = vmatpush3.bf16.msra.mxu0 %v1062_v62  ;;  %v279_v17 = vld [vmem:[%s1423_s20 + $0x8] sm:$0xff]  ;;  %v349_v23 = vld [vmem:[%s1708_s1 + $0x1f8] sm:$0xff]  ;;  %555 = vmatprep.mubr.f32.mxu1 %v281_v21  ;;  %v1102_v25 = vpack.c.bf16 %v331_v16, %v330_v15  ;;  %v300_v27 = vld [vmem:[%s1708_s1 + $0x70] sm:$0xff] }
  0x1b   : > { %1065 = vmatprep.subr.bf16.mxu0 %v1064_v0  ;;  %485 = vmatprep.mubr.f32.mxu0 %v279_v17  ;;  %v301_v28 = vld [vmem:[%s1708_s1 + $0x78] sm:$0xff]  ;;  %v332_v29 = vld [vmem:[%s1708_s1 + $0x170] sm:$0xff]  ;;  %v1104_v30 = vpack.c.bf16 %v349_v23, %v348_v22  ;;  %v366_v32 = vld [vmem:[%s1708_s1 + $0x280] sm:$0xff] }
  0x1c   : > { %1095 = vmatpush3.bf16.msra.mxu1 %v1094_v63  ;;  %v333_v31 = vld [vmem:[%s1708_s1 + $0x178] sm:$0xff]  ;;  %v367_v33 = vld [vmem:[%s1708_s1 + $0x288] sm:$0xff]  ;;  %v398_v34 = vld [vmem:[%s1708_s1 + $0x380] sm:$0xff]  ;;  %v1074_v36 = vpack.c.bf16 %v301_v28, %v300_v27 }
  0x1d   : > { %1097 = vmatprep.subr.bf16.mxu1 %v1096_v4  ;;  %v399_v35 = vld [vmem:[%s1708_s1 + $0x388] sm:$0xff]  ;;  %v1106_v37 = vpack.c.bf16 %v333_v31, %v332_v29  ;;  %v1108_v38 = vpack.c.bf16 %v367_v33, %v366_v32  ;;  %v350_v39 = vld [vmem:[%s1708_s1 + $0x200] sm:$0xff]  ;;  %v368_v44 = vld [vmem:[%s1708_s1 + $0x290] sm:$0xff] }
  0x1e   : > { %1067 = vmatpush3.bf16.msra.mxu0 %v1066_v10  ;;  %v351_v40 = vld [vmem:[%s1708_s1 + $0x208] sm:$0xff]  ;;  %v382_v41 = vld [vmem:[%s1708_s1 + $0x300] sm:$0xff]  ;;  %v1140_v42 = vpack.c.bf16 %v399_v35, %v398_v34  ;;  %v369_v45 = vld [vmem:[%s1708_s1 + $0x298] sm:$0xff] }
  0x1f   : > { %1069 = vmatprep.subr.bf16.mxu0 %v1068_v14  ;;  %v383_v43 = vld [vmem:[%s1708_s1 + $0x308] sm:$0xff]  ;;  %v400_v46 = vld [vmem:[%s1708_s1 + $0x390] sm:$0xff]  ;;  %v401_v47 = vld [vmem:[%s1708_s1 + $0x398] sm:$0xff]  ;;  %v1110_v49 = vpack.c.bf16 %v351_v40, %v350_v39  ;;  %v1112_v52 = vpack.c.bf16 %v369_v45, %v368_v44 }
  0x20   : > { %1099 = vmatpush3.bf16.msra.mxu1 %v1098_v13  ;;  %v278_v48 = vld [vmem:[%s1423_s20] sm:$0xff]  ;;  %v280_v50 = vld [vmem:[%s1423_s20 + $0x10] sm:$0xff]  ;;  %v1142_v51 = vpack.c.bf16 %v383_v43, %v382_v41  ;;  %v353_v54 = vld [vmem:[%s1708_s1 + $0x218] sm:$0xff]  ;;  %v1144_v56 = vpack.c.bf16 %v401_v47, %v400_v46 }
  0x21   : > { %1101 = vmatprep.subr.bf16.mxu1 %v1100_v18  ;;  %v352_v53 = vld [vmem:[%s1708_s1 + $0x210] sm:$0xff]  ;;  %v385_v57 = vld [vmem:[%s1708_s1 + $0x318] sm:$0xff]  ;;  %v370_v58 = vld [vmem:[%s1708_s1 + $0x2a0] sm:$0xff] }
  0x22   : > { %1071 = vmatpush3.bf16.msra.mxu0 %v1070_v24  ;;  %v384_v55 = vld [vmem:[%s1708_s1 + $0x310] sm:$0xff]  ;;  %v371_v59 = vld [vmem:[%s1708_s1 + $0x2a8] sm:$0xff]  ;;  %v402_v60 = vld [vmem:[%s1708_s1 + $0x3a0] sm:$0xff]  ;;  %v1114_v62 = vpack.c.bf16 %v353_v54, %v352_v53 }
  0x23   : > { %1073 = vmatprep.subr.bf16.mxu0 %v1072_v26  ;;  %v403_v61 = vld [vmem:[%s1708_s1 + $0x3a8] sm:$0xff]  ;;  %v1146_v63 = vpack.c.bf16 %v385_v57, %v384_v55  ;;  %v1116_v0 = vpack.c.bf16 %v371_v59, %v370_v58  ;;  %v354_v1 = vld [vmem:[%s1708_s1 + $0x220] sm:$0xff]  ;;  %v372_v6 = vld [vmem:[%s1708_s1 + $0x2b0] sm:$0xff] }
  0x24   : > { %1103 = vmatpush3.bf16.msra.mxu1 %v1102_v25  ;;  %v355_v2 = vld [vmem:[%s1708_s1 + $0x228] sm:$0xff]  ;;  %v386_v3 = vld [vmem:[%s1708_s1 + $0x320] sm:$0xff]  ;;  %v1148_v4 = vpack.c.bf16 %v403_v61, %v402_v60  ;;  %v373_v7 = vld [vmem:[%s1708_s1 + $0x2b8] sm:$0xff] }
  0x25   : > { %1105 = vmatprep.subr.bf16.mxu1 %v1104_v30  ;;  %v387_v5 = vld [vmem:[%s1708_s1 + $0x328] sm:$0xff]  ;;  %v404_v8 = vld [vmem:[%s1708_s1 + $0x3b0] sm:$0xff]  ;;  %v405_v9 = vld [vmem:[%s1708_s1 + $0x3b8] sm:$0xff]  ;;  %v1118_v10 = vpack.c.bf16 %v355_v2, %v354_v1  ;;  %v1120_v12 = vpack.c.bf16 %v373_v7, %v372_v6 }
  0x26   : > { %1075 = vmatpush3.bf16.msra.mxu0 %v1074_v36  ;;  %v1150_v11 = vpack.c.bf16 %v387_v5, %v386_v3  ;;  %v356_v13 = vld [vmem:[%s1708_s1 + $0x230] sm:$0xff]  ;;  %v357_v14 = vld [vmem:[%s1708_s1 + $0x238] sm:$0xff]  ;;  %v1152_v16 = vpack.c.bf16 %v405_v9, %v404_v8  ;;  %v374_v18 = vld [vmem:[%s1708_s1 + $0x2c0] sm:$0xff] }
  0x27   : > { %1109 = vmatprep.subr.bf16.mxu0 %v1108_v38  ;;  %v388_v15 = vld [vmem:[%s1708_s1 + $0x330] sm:$0xff]  ;;  %v389_v17 = vld [vmem:[%s1708_s1 + $0x338] sm:$0xff]  ;;  %v375_v19 = vld [vmem:[%s1708_s1 + $0x2c8] sm:$0xff]  ;;  %v1122_v22 = vpack.c.bf16 %v357_v14, %v356_v13 }
  0x28   : > { %1107 = vmatpush3.bf16.msra.mxu1 %v1106_v37  ;;  %v406_v20 = vld [vmem:[%s1708_s1 + $0x3c0] sm:$0xff]  ;;  %v407_v21 = vld [vmem:[%s1708_s1 + $0x3c8] sm:$0xff]  ;;  %v285_v24 = vld [vmem:[%s1423_s20 + $0x38] sm:$0xff]  ;;  %v1154_v25 = vpack.c.bf16 %v389_v17, %v388_v15  ;;  %v1124_v26 = vpack.c.bf16 %v375_v19, %v374_v18 }
  0x29   : > { %1141 = vmatprep.subr.bf16.mxu1 %v1140_v42  ;;  %486 = vmatmul.mubr.f32.vlgmr.msra.gmra.mrb[0].mxu0 %v278_v48  ;;  %v283_v23 = vld [vmem:[%s1423_s20 + $0x28] sm:$0xff]  ;;  %v358_v27 = vld [vmem:[%s1708_s1 + $0x240] sm:$0xff]  ;;  %v1156_v30 = vpack.c.bf16 %v407_v21, %v406_v20  ;;  %v376_v32 = vld [vmem:[%s1708_s1 + $0x2d0] sm:$0xff]  ;;  %v1205_v21 = vmov 0.0  }
  0x2a   : > { %1111 = vmatpush3.bf16.msra.mxu0 %v1110_v49  ;;  %v359_v28 = vld [vmem:[%s1708_s1 + $0x248] sm:$0xff]  ;;  %v390_v29 = vld [vmem:[%s1708_s1 + $0x340] sm:$0xff]  ;;  %v377_v33 = vld [vmem:[%s1708_s1 + $0x2d8] sm:$0xff]  ;;  %625 = vmatprep.mubr.f32.mxu0 %v283_v23 }
  0x2b   : > { %556 = vmatmul.mubr.f32.vlgmr.msra.gmra.mrb[0].mxu1 %v280_v50  ;;  %1113 = vmatprep.subr.bf16.mxu0 %v1112_v52  ;;  %v391_v31 = vld [vmem:[%s1708_s1 + $0x348] sm:$0xff]  ;;  %v408_v34 = vld [vmem:[%s1708_s1 + $0x3d0] sm:$0xff]  ;;  %v409_v35 = vld [vmem:[%s1708_s1 + $0x3d8] sm:$0xff]  ;;  %v1126_v36 = vpack.c.bf16 %v359_v28, %v358_v27  ;;  %v1128_v38 = vpack.c.bf16 %v377_v33, %v376_v32 }
  0x2c   : > { %1143 = vmatpush3.bf16.msra.mxu1 %v1142_v51  ;;  %695 = vmatprep.mubr.f32.mxu1 %v285_v24  ;;  %v1158_v37 = vpack.c.bf16 %v391_v31, %v390_v29  ;;  %v360_v39 = vld [vmem:[%s1708_s1 + $0x250] sm:$0xff]  ;;  %v361_v40 = vld [vmem:[%s1708_s1 + $0x258] sm:$0xff]  ;;  %v1160_v42 = vpack.c.bf16 %v409_v35, %v408_v34  ;;  %v378_v44 = vld [vmem:[%s1708_s1 + $0x2e0] sm:$0xff] }
  0x2d   : > { %1145 = vmatprep.subr.bf16.mxu1 %v1144_v56  ;;  %v392_v41 = vld [vmem:[%s1708_s1 + $0x350] sm:$0xff]  ;;  %v393_v43 = vld [vmem:[%s1708_s1 + $0x358] sm:$0xff]  ;;  %v379_v45 = vld [vmem:[%s1708_s1 + $0x2e8] sm:$0xff]  ;;  %v1130_v48 = vpack.c.bf16 %v361_v40, %v360_v39 }
  0x2e   : > { %1115 = vmatpush3.bf16.msra.mxu0 %v1114_v62  ;;  %v410_v46 = vld [vmem:[%s1708_s1 + $0x3e0] sm:$0xff]  ;;  %v411_v47 = vld [vmem:[%s1708_s1 + $0x3e8] sm:$0xff]  ;;  %v1162_v49 = vpack.c.bf16 %v393_v43, %v392_v41  ;;  %v1132_v50 = vpack.c.bf16 %v379_v45, %v378_v44  ;;  %v380_v56 = vld [vmem:[%s1708_s1 + $0x2f0] sm:$0xff] }
  0x2f   : > { %1117 = vmatprep.subr.bf16.mxu0 %v1116_v0  ;;  %v362_v51 = vld [vmem:[%s1708_s1 + $0x260] sm:$0xff]  ;;  %v363_v52 = vld [vmem:[%s1708_s1 + $0x268] sm:$0xff]  ;;  %v1164_v54 = vpack.c.bf16 %v411_v47, %v410_v46  ;;  %v381_v57 = vld [vmem:[%s1708_s1 + $0x2f8] sm:$0xff] }
  0x30   : > { %1147 = vmatpush3.bf16.msra.mxu1 %v1146_v63  ;;  %v394_v53 = vld [vmem:[%s1708_s1 + $0x360] sm:$0xff]  ;;  %v395_v55 = vld [vmem:[%s1708_s1 + $0x368] sm:$0xff]  ;;  %v412_v58 = vld [vmem:[%s1708_s1 + $0x3f0] sm:$0xff]  ;;  %v1134_v60 = vpack.c.bf16 %v363_v52, %v362_v51  ;;  %v1136_v62 = vpack.c.bf16 %v381_v57, %v380_v56 }
  0x31   : > { %1149 = vmatprep.subr.bf16.mxu1 %v1148_v4  ;;  %v413_v59 = vld [vmem:[%s1708_s1 + $0x3f8] sm:$0xff]  ;;  %v1166_v61 = vpack.c.bf16 %v395_v55, %v394_v53  ;;  %v364_v63 = vld [vmem:[%s1708_s1 + $0x270] sm:$0xff]  ;;  %v282_v6 = vld [vmem:[%s1423_s20 + $0x20] sm:$0xff] }
  0x32   : > { %1119 = vmatpush3.bf16.msra.mxu0 %v1118_v10  ;;  %v365_v0 = vld [vmem:[%s1708_s1 + $0x278] sm:$0xff]  ;;  %v1168_v1 = vpack.c.bf16 %v413_v59, %v412_v58  ;;  %v396_v2 = vld [vmem:[%s1708_s1 + $0x370] sm:$0xff]  ;;  %v702_v8 = vld [vmem:[%s1710_s3] sm:$0xff] }
  0x33   : > { %1121 = vmatprep.subr.bf16.mxu0 %v1120_v12  ;;  %v397_v3 = vld [vmem:[%s1708_s1 + $0x378] sm:$0xff]  ;;  %v1138_v4 = vpack.c.bf16 %v365_v0, %v364_v63  ;;  %v284_v7 = vld [vmem:[%s1423_s20 + $0x30] sm:$0xff]  ;;  %v703_v9 = vld [vmem:[%s1710_s3 + $0x8] sm:$0xff] }
  0x34   : > { %1151 = vmatpush3.bf16.msra.mxu1 %v1150_v11  ;;  %v1170_v5 = vpack.c.bf16 %v397_v3, %v396_v2  ;;  %v704_v10 = vld [vmem:[%s1710_s3 + $0x10] sm:$0xff]  ;;  %v1203_v11 = vmov 0.0|0.0   ;;  %v1173_v12 = vpack.c.bf16 %v703_v9, %v702_v8  ;;  %v705_v13 = vld [vmem:[%s1710_s3 + $0x18] sm:$0xff]  ;;  %v706_v15 = vld [vmem:[%s1710_s3 + $0x20] sm:$0xff] }
  0x35   : > { %1153 = vmatprep.subr.bf16.mxu1 %v1152_v16  ;;  %v1176_v14 = vpack.c.bf16 %v705_v13, %v704_v10  ;;  %v707_v16 = vld [vmem:[%s1710_s3 + $0x28] sm:$0xff]  ;;  %v708_v18 = vld [vmem:[%s1710_s3 + $0x30] sm:$0xff]  ;;  %v709_v19 = vld [vmem:[%s1710_s3 + $0x38] sm:$0xff] }
  0x36   : > { %1123 = vmatpush3.bf16.msra.mxu0 %v1122_v22  ;;  %v1179_v17 = vpack.c.bf16 %v707_v16, %v706_v15  ;;  %v1182_v20 = vpack.c.bf16 %v709_v19, %v708_v18  ;;  %v869_v23 = vld [vmem:[%s1709_s2] ss:$0 sm:$0xff] }
  0x37   : > { %1125 = vmatprep.subr.bf16.mxu0 %v1124_v26  ;;  %v870_v40 = vld [vmem:[%s1711_s4] ss:$0 sm:$0xff] }
  0x38   : > { %1155 = vmatpush3.bf16.msra.mxu1 %v1154_v25  ;;  %v872_v44 = vld [vmem:[%s1712_s5] ss:$0 sm:$0xff] }
  0x39   : > { %1157 = vmatprep.subr.bf16.mxu1 %v1156_v30 }
  0x3a   : > { %1127 = vmatpush3.bf16.msra.mxu0 %v1126_v36 }
  0x3b   : > { %1129 = vmatprep.subr.bf16.mxu0 %v1128_v38 }
  0x3c   : > { %1159 = vmatpush3.bf16.msra.mxu1 %v1158_v37 }
  0x3d   : > { %1161 = vmatprep.subr.bf16.mxu1 %v1160_v42 }
  0x3e   : > { %1131 = vmatpush3.bf16.msra.mxu0 %v1130_v48  ;;  %v804_v48 = vstv %s803_s9 }
  0x3f   : > { %1133 = vmatprep.subr.bf16.mxu0 %v1132_v50 }
  0x40   : > { %1163 = vmatpush3.bf16.msra.mxu1 %v1162_v49 }
  0x41   : > { %1165 = vmatprep.subr.bf16.mxu1 %v1164_v54 }
  0x42   : > { %1135 = vmatpush3.bf16.msra.mxu0 %v1134_v60 }
  0x43   : > { %1137 = vmatprep.subr.bf16.mxu0 %v1136_v62 }
  0x44   : > { %1167 = vmatpush3.bf16.msra.mxu1 %v1166_v61 }
  0x45   : > { %1169 = vmatprep.subr.bf16.mxu1 %v1168_v1 }
  0x46   : > { %1139 = vmatpush3.bf16.msra.mxu0 %v1138_v4 }
  0x47   : > { %1172 = vmatprep.subr.bf16.mxu0 %v1203_v11 }
  0x48   : > { %1171 = vmatpush3.bf16.msra.mxu1 %v1170_v5 }
  0x49   : > { %626 = vmatmul.mubr.f32.vlgmr.msra.gmra.mrb[2].mxu0 %v282_v6 }
  0x4a   : > { %1174 = vmatpush3.bf16.msra.mxu0 %v1173_v12  ;;  %1041 = vmatprep.mubr.msk.f32.mxu0 %vm1204_vm0, %v1205_v21 }
  0x4b   : > { %696 = vmatmul.mubr.f32.vlgmr.msra.gmra.mrb[2].mxu1 %v284_v7  ;;  %1175 = vmatprep.subr.bf16.mxu0 %v1203_v11 }
  0x4e   : > { %1177 = vmatpush3.bf16.msra.mxu0 %v1176_v14 }
  0x4f   : > { %1178 = vmatprep.subr.bf16.mxu0 %v1203_v11 }
  0x52   : > { %1180 = vmatpush3.bf16.msra.mxu0 %v1179_v17 }
  0x53   : > { %1181 = vmatprep.subr.bf16.mxu0 %v1203_v11 }
  0x56   : > { %1183 = vmatpush3.bf16.msra.mxu0 %v1182_v20 }
  0xfc   : > { %v908_v22 = vpop.f32.mrb[0].mxu0 }
  0xfd   : > { %v909_v24 = vpop.f32.mrb[1].mxu0 }
  0xfe   : > { %v943_v25 = vpop.f32.mrb[0].mxu1  ;;  %v910_v26 = vadd.f32 %v909_v24, %v908_v22 }
  0xff   : > { %v944_v27 = vpop.f32.mrb[1].mxu1 }
 0x100   : > { %v945_v28 = vadd.f32 %v944_v27, %v943_v25  ;;  %v488_v29 = vadd.f32 %v910_v26, %v869_v23 }
 0x102   : > { %v558_v30 = vadd.f32 %v945_v28, %v488_v29 }
 0x11c   : > { %v978_v31 = vpop.f32.mrb[2].mxu0 }
 0x11d   : > { %v979_v32 = vpop.f32.mrb[3].mxu0 }
 0x11e   : > { %v1013_v33 = vpop.f32.mrb[2].mxu1  ;;  %v980_v34 = vadd.f32 %v979_v32, %v978_v31 }
 0x11f   : > { %v1014_v35 = vpop.f32.mrb[3].mxu1 }
 0x120   : > { %v1015_v36 = vadd.f32 %v1014_v35, %v1013_v33  ;;  %v628_v37 = vadd.f32 %v980_v34, %v558_v30 }
 0x122   : > { %v698_v38 = vadd.f32 %v1015_v36, %v628_v37 }
 0x124   : > { %v701_v39 = vmax.f32 %v698_v38, 0.0 }
 0x126   : > { %1042 = vmatmul.mubr.msk.f32.vlgmr.msra.gmra.mrb[4].mxu0 %vm717_vm1, %v701_v39 }
 0x1f9   : > { %v787_v41 = vpop.f32.mrb[4].mxu0 }
 0x1fa   : > { %v788_v42 = vadd.f32 %v870_v40, %v787_v41  ;;  %v1043_v43 = vpop.f32.mrb[5].mxu0 }
 0x1fc   : > { %v791_v45 = vmax.f32 %v788_v42, 0.0 }
 0x1fe   : > { %v799_v46 = vmul.f32 %v872_v44, %v791_v45 }
 0x200   : > { %v800_v47 = vsel %vm717_vm1, %v799_v46, 0.0 }
 0x201   : > { %801 = vadd.xlane.f32.xlu0 %v800_v47 }
 0x28e   : > { %v802_v49 = vpop.xlane.xlu0 %801 }
 0x28f   : > { %v805_v50 = vadd.f32 %v804_v48, %v802_v49 }
 0x291   : > { %807 = vst.msk [vmem:[%s277_s13] sm:$0xff] %vm806_vm2, %v805_v50 }
 0x292 PF: > { %s18_s26 = sadd.s32 1, %s1201_s26  }
 0x293   : > { %p15_p4 = scmp.ge.s32.totalorder %s18_s26, 4  }
 0x295   :  { %17 = sbr.rel (!%p15_p4) target bundleno = 2 (0x2), region = 78 }

</bundles_post_ra>
